<compile_context>
chip_gen: v7x
topology: tpu7x:2x2x1
jax: 0.10.0
libtpu: 0.0.40
codegen_flags: <defaults>
</compile_context>

<pallas_src>
import jax
import jax.numpy as jnp
from jax import lax
from jax.experimental import pallas as pl
from jax.experimental.pallas import tpu as pltpu


# ----------------------------------------------------------------------------
# kernels
# ----------------------------------------------------------------------------
def _conv1x1_add_kernel(x_ref, w_ref, b_ref, y_ref, o_ref):
    # x_ref: (Cin, TM)   w_ref: (Cout, Cin)   b_ref: (Cout, 1)
    # y_ref/o_ref: (Cout, TM)   -- TM is the lane-dense flattened spatial tile.
    y0 = jnp.dot(w_ref[...], x_ref[...], preferred_element_type=jnp.float32)
    o_ref[...] = (y0 + b_ref[...] + y_ref[...]).astype(o_ref.dtype)


def _add_kernel(x_ref, y_ref, o_ref):
    o_ref[...] = x_ref[...] + y_ref[...]


# ----------------------------------------------------------------------------
# helpers
# ----------------------------------------------------------------------------
def _choose_tile(m):
    """Largest lane-dense tile (multiple of 128) that divides m, else full m."""
    for tm in (2048, 1024, 512, 256, 128):
        if m % tm == 0:
            return tm
    return m  # small / ragged spatial extent: use the full axis as one block


def _vmem_budget(tm, cin, cout):
    # 2x double-buffered x/y/out tiles + params, x4 slack, clamped to the
    # smallest scoped-VMEM default across generations (16 MiB on v5e).
    per_step = 4 * (2 * tm * (cin + 2 * cout) + 2 * (cout * cin + cout))
    return int(min(max(4 * per_step, 4 * 1024 * 1024), 16 * 1024 * 1024))


# ----------------------------------------------------------------------------
# forward paths
# ----------------------------------------------------------------------------
def _conv1x1_shortcut(x, y, weight, bias, stride):
    N, Cin, H, W = x.shape
    Cout = weight.shape[0]

    # Spatial subsample for stride>1 (no-op for stride==1), then flatten H,W
    # into one lane-dense axis.  Still NCHW -> reshape is contiguous.
    xs = x[:, :, ::stride, ::stride]
    Ho, Wo = xs.shape[2], xs.shape[3]
    M = Ho * Wo

    xs = xs.reshape(N, Cin, M).astype(jnp.float32)
    yf = y.reshape(N, Cout, M).astype(jnp.float32)
    w = weight.reshape(Cout, Cin).astype(jnp.float32)
    b = bias.reshape(Cout, 1).astype(jnp.float32)

    TM = _choose_tile(M)
    grid = (N, M // TM)

    out = pl.pallas_call(
        _conv1x1_add_kernel,
        out_shape=jax.ShapeDtypeStruct((N, Cout, M), jnp.float32),
        grid_spec=pltpu.PrefetchScalarGridSpec(
            num_scalar_prefetch=0,
            grid=grid,
            in_specs=[
                pl.BlockSpec((None, Cin, TM), lambda n, m: (n, 0, m)),
                pl.BlockSpec((Cout, Cin), lambda n, m: (0, 0)),
                pl.BlockSpec((Cout, 1), lambda n, m: (0, 0)),
                pl.BlockSpec((None, Cout, TM), lambda n, m: (n, 0, m)),
            ],
            out_specs=pl.BlockSpec((None, Cout, TM), lambda n, m: (n, 0, m)),
        ),
        compiler_params=pltpu.CompilerParams(
            dimension_semantics=("parallel", "parallel"),
            vmem_limit_bytes=_vmem_budget(TM, Cin, Cout),
        ),
    )(xs, w, b, yf)
    return out.reshape(N, Cout, Ho, Wo)


def _residual_add(x, y):
    N, C, H, W = x.shape
    M = H * W
    xf = x.reshape(N, C, M).astype(jnp.float32)
    yf = y.reshape(N, C, M).astype(jnp.float32)

    TM = _choose_tile(M)
    grid = (N, M // TM)

    out = pl.pallas_call(
        _add_kernel,
        out_shape=jax.ShapeDtypeStruct((N, C, M), jnp.float32),
        grid_spec=pltpu.PrefetchScalarGridSpec(
            num_scalar_prefetch=0,
            grid=grid,
            in_specs=[pl.BlockSpec((None, C, TM), lambda n, m: (n, 0, m))] * 2,
            out_specs=pl.BlockSpec((None, C, TM), lambda n, m: (n, 0, m)),
        ),
        compiler_params=pltpu.CompilerParams(
            dimension_semantics=("parallel", "parallel"),
            vmem_limit_bytes=_vmem_budget(TM, C, C),
        ),
    )(xf, yf)
    return out.reshape(N, C, H, W)


def shortcut_forward(x, y, weight=None, bias=None, *, in_filters, nb_filters,
                     subsample=1):
    """Forward pass of `_shortcut`. x: (N, in_filters, H, W); y matches output."""
    process = (in_filters != nb_filters) or (subsample != 1)
    if process:
        return _conv1x1_shortcut(x, y, weight, bias, subsample)
    return _residual_add(x, y)


# ----------------------------------------------------------------------------
# reference + self-test
# ----------------------------------------------------------------------------
def _reference_shortcut(x, y, weight, bias, in_filters, nb_filters, subsample):
    if in_filters != nb_filters or subsample != 1:
        y0 = lax.conv_general_dilated(
            x, weight, (subsample, subsample), [(0, 0), (0, 0)],
            dimension_numbers=("NCHW", "OIHW", "NCHW"))
        return y0 + bias.reshape(1, -1, 1, 1) + y
    return x + y


if __name__ == "__main__":
    key = jax.random.PRNGKey(0)
    N, in_filters, H, W = 2, 4, 16, 16
    nb_filters, subsample = 8, 1            # in_filters != nb_filters -> 1x1 conv path

    k_x, k_y, k_w, k_b, k_x2, k_y2 = jax.random.split(key, 6)
    x = jax.random.normal(k_x, (N, in_filters, H, W), jnp.float32)
    y = jax.random.normal(k_y, (N, nb_filters, H, W), jnp.float32)

    # Deterministic PyTorch-style Conv2d init (kaiming-uniform bound = 1/sqrt(fan_in)).
    fan_in = in_filters * 1 * 1
    bound = 1.0 / (fan_in ** 0.5)
    weight = jax.random.uniform(k_w, (nb_filters, in_filters, 1, 1), jnp.float32,
                                -bound, bound)
    bias = jax.random.uniform(k_b, (nb_filters,), jnp.float32, -bound, bound)

    # --- projection path: Conv2d(1x1, stride=subsample)(x) + y ---------------
    out = shortcut_forward(x, y, weight, bias, in_filters=in_filters,
                           nb_filters=nb_filters, subsample=subsample)
    out = jax.block_until_ready(out)
    ref = _reference_shortcut(x, y, weight, bias, in_filters, nb_filters, subsample)
    assert out.shape == (N, nb_filters, H, W)
    assert jnp.allclose(out, ref, rtol=1e-5, atol=1e-5), "conv-shortcut mismatch"

    # --- identity path: x + y -------------------------------------------------
    x2 = jax.random.normal(k_x2, (N, in_filters, H, W), jnp.float32)
    y2 = jax.random.normal(k_y2, (N, in_filters, H, W), jnp.float32)
    out2 = shortcut_forward(x2, y2, in_filters=in_filters, nb_filters=in_filters,
                            subsample=1)
    out2 = jax.block_until_ready(out2)
    assert jnp.allclose(out2, x2 + y2, rtol=1e-6, atol=1e-6), "identity-shortcut mismatch"

    # TODO(synk): subsample > 1 is handled via a wrapper-side strided slice on x
    # (the module default and both demo cases use subsample=1).
    print("KERNEL_OK")
</pallas_src>

<mosaic_0001>
module attributes {stable_mosaic.version = 11 : i64} {
  func.func @_conv1x1_add_kernel(%arg0: i32, %arg1: i32, %arg2: memref<1x4x256xf32, #tpu.memory_space<vmem>>, %arg3: memref<8x4xf32, #tpu.memory_space<vmem>>, %arg4: memref<8x1xf32, #tpu.memory_space<vmem>>, %arg5: memref<1x8x256xf32, #tpu.memory_space<vmem>>, %arg6: memref<1x8x256xf32, #tpu.memory_space<vmem>>) attributes {dimension_semantics = [#tpu.dimension_semantics<parallel>, #tpu.dimension_semantics<parallel>], iteration_bounds = array<i64: 2, 1>, scalar_prefetch = 0 : i64, scratch_operands = 0 : i64, tpu.core_type = #tpu.core_type<tc>, window_params = [{transform_indices = @transform_0, window_bounds = array<i64: 1, 4, 256>}, {pipeline_mode = #tpu.pipeline_mode<synchronous>, transform_indices = @transform_1, window_bounds = array<i64: 8, 4>}, {pipeline_mode = #tpu.pipeline_mode<synchronous>, transform_indices = @transform_2, window_bounds = array<i64: 8, 1>}, {transform_indices = @transform_3, window_bounds = array<i64: 1, 8, 256>}, {transform_indices = @transform_4, window_bounds = array<i64: 1, 8, 256>}]} {
    %c0 = arith.constant 0 : index
    %c0_0 = arith.constant 0 : index
    %0 = vector.load %arg3[%c0, %c0_0] : memref<8x4xf32, #tpu.memory_space<vmem>>, vector<8x4xf32>
    %c0_1 = arith.constant 0 : index
    %c0_2 = arith.constant 0 : index
    %c0_3 = arith.constant 0 : index
    %1 = vector.load %arg2[%c0_1, %c0_2, %c0_3] : memref<1x4x256xf32, #tpu.memory_space<vmem>>, vector<1x4x256xf32>
    %2 = vector.shape_cast %1 : vector<1x4x256xf32> to vector<4x256xf32>
    %cst = arith.constant dense<0.000000e+00> : vector<8x256xf32>
    %3 = tpu.matmul %0, %2, %cst {dimension_numbers = #tpu.dot_dimension_numbers<[1], [0], [0], [1], [0, 0, 1, 1], [], []>} : vector<8x4xf32>, vector<4x256xf32>, vector<8x256xf32> -> vector<8x256xf32>
    %c0_4 = arith.constant 0 : index
    %c0_5 = arith.constant 0 : index
    %4 = vector.load %arg4[%c0_4, %c0_5] : memref<8x1xf32, #tpu.memory_space<vmem>>, vector<8x1xf32>
    %5 = vector.broadcast %4 : vector<8x1xf32> to vector<8x256xf32>
    %6 = arith.addf %3, %5 : vector<8x256xf32>
    %c0_6 = arith.constant 0 : index
    %c0_7 = arith.constant 0 : index
    %c0_8 = arith.constant 0 : index
    %7 = vector.load %arg5[%c0_6, %c0_7, %c0_8] : memref<1x8x256xf32, #tpu.memory_space<vmem>>, vector<1x8x256xf32>
    %8 = vector.shape_cast %7 : vector<1x8x256xf32> to vector<8x256xf32>
    %9 = arith.addf %6, %8 : vector<8x256xf32>
    %c0_9 = arith.constant 0 : index
    %c0_10 = arith.constant 0 : index
    %c0_11 = arith.constant 0 : index
    %10 = vector.load %arg6[%c0_9, %c0_10, %c0_11] : memref<1x8x256xf32, #tpu.memory_space<vmem>>, vector<1x8x256xf32>
    %11 = vector.shape_cast %10 : vector<1x8x256xf32> to vector<8x256xf32>
    %12 = vector.shape_cast %9 : vector<8x256xf32> to vector<1x8x256xf32>
    tpu.vector_store %arg6[%c0_9, %c0_10, %c0_11], %12 {strides = array<i32>} : memref<1x8x256xf32, #tpu.memory_space<vmem>>, vector<1x8x256xf32>,
    return
  }
  func.func @transform_0(%arg0: i32, %arg1: i32) -> (i32, i32, i32) {
    %c0_i32 = arith.constant 0 : i32
    %c0_i32_0 = arith.constant 0 : i32
    return %arg0, %c0_i32, %arg1 : i32, i32, i32
  }
  func.func @transform_1(%arg0: i32, %arg1: i32) -> (i32, i32) {
    %c0_i32 = arith.constant 0 : i32
    %c0_i32_0 = arith.constant 0 : i32
    %c0_i32_1 = arith.constant 0 : i32
    return %c0_i32, %c0_i32_0 : i32, i32
  }
  func.func @transform_2(%arg0: i32, %arg1: i32) -> (i32, i32) {
    %c0_i32 = arith.constant 0 : i32
    %c0_i32_0 = arith.constant 0 : i32
    %c0_i32_1 = arith.constant 0 : i32
    return %c0_i32, %c0_i32_0 : i32, i32
  }
  func.func @transform_3(%arg0: i32, %arg1: i32) -> (i32, i32, i32) {
    %c0_i32 = arith.constant 0 : i32
    %c0_i32_0 = arith.constant 0 : i32
    return %arg0, %c0_i32, %arg1 : i32, i32, i32
  }
  func.func @transform_4(%arg0: i32, %arg1: i32) -> (i32, i32, i32) {
    %c0_i32 = arith.constant 0 : i32
    %c0_i32_0 = arith.constant 0 : i32
    return %arg0, %c0_i32, %arg1 : i32, i32, i32
  }
}

</mosaic_0001>

<bundles_post_ra>
// kernel: tpu_custom_call.1
= control target key start
LH: loop header
LB: loop body
LE: loop exit
PB: predicated region body
PF: predicated region fallthrough
CT: control target
= control target key end

     0   :  { %9 = vsyncpa [#allocation3], 0  ;;  %s901_s0 = inlined_call_operand.hbm [shape: f32[2,4,256], index: 0, kind: input, shape index: {}]   ;;  %s902_s1 = inlined_call_operand.vmem [shape: f32[8,4], index: 1, kind: input, shape index: {}]   ;;  %s903_s2 = inlined_call_operand.vmem [shape: f32[8,1], index: 2, kind: input, shape index: {}]   ;;  %s904_s3 = inlined_call_operand.vmem [shape: f32[2,8,256], index: 3, kind: input, shape index: {}]   ;;  %s905_s4 = inlined_call_operand.hbm [shape: f32[2,8,256], index: 4, kind: output, shape index: {}]  }
   0x1   :  { %11 = vsyncpa [#allocation3 + $0x1], 0 }
   0x2   :  { %12 = vsyncpa [#allocation4], 0 }
   0x3   :  { %14 = vsyncpa [#allocation4 + $0x1], 0  ;;  %s717_s15 = smov 0   ;;  %s719_s16 = smov 0  }
   0x4   :  { %s721_s17 = smov 0   ;;  %s723_s18 = smov 0  }
   0x5   :  { %s725_s19 = smov 0   ;;  %s727_s20 = smov 0  }
   0x6 LB: > { %s485_s21 = sadd.s32 4294967295, %s686_s20   ;;  %s486_s22 = sadd.s32 4294967294, %s686_s20   ;;  %s686_s20 = sphi %s727_s20, %s20_s20   ;;  %s682_s19 = sphi %s725_s19, %s921_s19   ;;  %s678_s18 = sphi %s723_s18, %s920_s18   ;;  %s674_s17 = sphi %s721_s17, %s919_s17   ;;  %s670_s16 = sphi %s719_s16, %s918_s16   ;;  %s666_s15 = sphi %s717_s15, %s917_s15  }
   0x7   : > { %s32_s23 = sadd.s32 1, %s682_s19  ;;  %s41_s24 = sadd.s32 1, %s674_s17 }
   0x8   : > { %p34_p0 = scmp.ge.s32.totalorder %s32_s23, 2  ;;  %p48_p1 = scmp.ne.s32.totalorder %s674_s17, %s670_s16 }
   0x9   : > { %p49_p2 = scmp.eq.s32.totalorder %s686_s20, 0  ;;  %p54_p3 = scmp.ne.s32.totalorder %s670_s16, %s666_s15 }
   0xa   : > { %s923_s23 = smov (%p34_p0, %s32_s23), 0  ;;  %p55_p5 = scmp.eq.s32.totalorder %s485_s21, 0 }
   0xb   : > { %p758_p4 = por %p49_p2, %p48_p1  ;;  %s36_s26 = ssub.s32 %s682_s19, %s923_s23 }
   0xc   : > { %p150_p6 = scmp.eq.s32.totalorder %s485_s21, 1  ;;  %p39_p7 = scmp.eq.s32.totalorder %s36_s26, 0 }
   0xd   : > { %p764_p8 = por %p55_p5, %p54_p3  ;;  %p156_p10 = scmp.eq.s32.totalorder %s486_s22, 1 }
   0xe   : > { %p768_p9 = por %p150_p6, %p48_p1  ;;  %p520_p13 = scmp.lt.s32.totalorder %s686_s20, 2 }
   0xf   : > { %s773_s29 = scalar_select %p39_p7, %s674_s17, %s41_s24  }
  0x10   : > { %s909_s28 = scalar_select %p768_p9, 1, 0 }
  0x11   : > { %p775_p11 = por %p156_p10, %p54_p3  ;;  %s182_s5 = sand.u32 1, %s674_s17  }
  0x12   : > { %s489_s6 = sshll.u32 %s182_s5, 3  ;;  %s505_s7 = sshll.u32 %s682_s19, 7 }
  0x13   : > { %s910_s30 = scalar_select %p775_p11, 1, 0 }
  0x14   : > { %s786_s10 = scalar_lea.hbm %s901_s0, %s505_s7  ;;  %s186_s11 = scalar_lea.vmem [#allocation2], %s489_s6 }
  0x15   : > { %s196_s12 = sshll.u32 %s186_s11, 4  ;;  %p792_p0 = pnand %p520_p13, %p758_p4  ;;  %s788_s12 = int_to_ptr.vmem [resolvable:$true] %s196_s12 }
  0x16   : > { %s183_s14 = scalar_lea.sflag [#allocation3], %s182_s5  ;;  %s574_s21 = scalar_lea.hbm %s786_s10, 128 }
  0x17   : > { %p575_p3 = scmp.ne.s32.totalorder %s786_s10, %s574_s21  ;;  %p576_p5 = pneg %p792_p0 }
  0x18   : > { %s579_s25 = scalar_lea.hbm %s901_s0, 256  ;;  %p580_p4 = scmp.lt.u32.totalorder %s786_s10, %s901_s0 }
  0x19   : > { %p577_p6 = pnand %p576_p5, %p575_p3  ;;  %p581_p10 = scmp.lt.u32.totalorder %s579_s25, %s574_s21 }
  0x1a   : > { %p583_p12 = scmp.lt.u32.totalorder %s574_s21, %s786_s10 }
  0x1b   : > { %p578_p7 = pneg %p577_p6  ;;  %p582_p13 = por %p581_p10, %p580_p4 }
  0x1d   : > { %p584_p1 = por %p583_p12, %p582_p13 }
  0x1f   : > { %p585_p2 = pnand %p584_p1, %p578_p7 }
  0x21   : > { %588 = shalt.err (!%p585_p2)
}
  0x22   : > { %s589_s5 = scalar_lea.vmem %s788_s12, 128  ;;  %s688_s7 = smov [#allocation2]  }
  0x23   : > { %p590_p3 = scmp.ne.s32.totalorder %s788_s12, %s589_s5  ;;  %s594_s8 = sshll.u32 %s688_s7, 4  ;;  %s595_s8 = int_to_ptr.vmem [resolvable:$false] %s594_s8 }
  0x24   : > { %s596_s9 = scalar_lea.vmem %s595_s8, 256  ;;  %p597_p9 = scmp.lt.s32.totalorder %s788_s12, %s595_s8 }
  0x25   : > { %p592_p6 = pnand %p590_p3, %p576_p5  ;;  %p598_p4 = scmp.lt.s32.totalorder %s596_s9, %s589_s5 }
  0x27   : > { %p593_p11 = pneg %p592_p6  ;;  %p599_p10 = por %p598_p4, %p597_p9 }
  0x29   : > { %p600_p12 = pnand %p599_p10, %p593_p11 }
  0x2b   : > { %603 = shalt.err (!%p600_p12)
}
  0x2c   : > { %515 = dma.hbm_to_vmem [thread:$0]  (!%p792_p0), %s786_s10, 128, %s788_s12, %s183_s14  }
  0x2d   : > { %p912_p1 = scmp.lt.s32.totalorder %s686_s20, 3  ;;  %p913_p2 = scmp.ge.s32.totalorder %s686_s20, 1 }
  0x2f   : > { %p215_p5 = pnand %p913_p2, %p912_p1 }
  0x30   : > { %s828_s11 = sand.u32 (!%p215_p5), 1, %s670_s16  }
  0x31   : > { %218 = sbr.rel (%p215_p5) target bundleno = 293 (0x125), region = 36  ;;  %s493_s21 = sshll.u32 (!%p215_p5), %s828_s11, 3 }
  0x32   : > { %s221_s22 = scalar_lea.sflag (!%p215_p5), [#allocation3], %s828_s11  ;;  %s224_s24 = scalar_lea.vmem (!%p215_p5), [#allocation2], %s493_s21 }
  0x38   : > { %657 = dma.done.wait (%p764_p8), %s221_s22, 128  }
  0x39   : > { %659 = vsyncadd (%p764_p8), %s221_s22, 4294967168  ;;  %v689_v0 = vmov 0.0   ;;  %v690_v1 = vmov 0   ;;  %v271_v2 = vld [vmem:[%s224_s24] sm:$0xff]  ;;  %vm284_vm0 = vcmask 1043456   ;;  %vm280_vm1 = vcmask 31744  }
  0x3a   : > { %353 = vmatprep.mubr.f32.mxu0 %v689_v0  ;;  %572 = vset.pattern.permute.xlu0 %v690_v1  ;;  %v272_v3 = vld [vmem:[%s903_s2] sm:$0xff]  ;;  %v279_v4 = vcombine.high %v271_v2, %v271_v2  ;;  %p260_p8 = scmp.lt.s32.totalorder %s678_s18, 1  ;;  %s494_s26 = sshll.u32 %s828_s11, 4 }
  0x3b   : > { %275 = vperm.xlu0 %572, %v272_v3   ;;  %v270_v5 = vld [vmem:[%s902_s1] sm:$0xff]  ;;  %s507_s8 = sshll.u32 %s678_s18, 8  ;;  %s257_s9 = scalar_lea.vmem [#allocation5], %s494_s26 }
  0x3c   : > { %497 = vmatprep.subr.msk.mxu0 %vm284_vm0, %v279_v4  ;;  %s261_s27 = scalar_select %p260_p8, %s678_s18, 1 }
  0x3d   : > { %498 = vmatpush1.msk.msra.mxu0 %vm284_vm0, %v271_v2  ;;  %s383_s21 = sshll.u32 %s257_s9, 4  ;;  %s852_s10 = scalar_lea.hbm %s905_s4, %s507_s8  ;;  %s854_s21 = int_to_ptr.vmem [resolvable:$true] %s383_s21 }
  0x3e   : > { %499 = vmatmul.mubr.msk.f32.vlgmr.msra.gmra.mrb[0].mxu0 %vm280_vm1, %v270_v5  ;;  %s506_s25 = sshll.u32 %s261_s27, 4  ;;  %s367_s12 = scalar_lea.sflag [#allocation4], %s828_s11 }
  0x3f   : > { %s267_s7 = scalar_lea.vmem %s904_s3, %s506_s25  ;;  %s604_s13 = scalar_lea.vmem %s854_s21, 256 }
  0x40   : > { %v360_v8 = vld [vmem:[%s267_s7] sm:$0xff]  ;;  %v361_v11 = vld [vmem:[%s267_s7 + $0x8] sm:$0xff]  ;;  %p605_p9 = scmp.ne.s32.totalorder %s854_s21, %s604_s13  ;;  %p914_p11 = scmp.ne.s32.totalorder %s909_s28, 0 }
  0x41   : > { %s691_s18 = smov [#allocation5]  }
  0x42   : > { %p606_p0 = pnand %p605_p9, %p914_p11  ;;  %s608_s14 = sshll.u32 %s691_s18, 4  ;;  %s609_s14 = int_to_ptr.vmem [resolvable:$false] %s608_s14 }
  0x43   : > { %s610_s27 = scalar_lea.vmem %s609_s14, 512  ;;  %p611_p13 = scmp.lt.s32.totalorder %s854_s21, %s609_s14 }
  0x44   : > { %p607_p7 = pneg %p606_p0  ;;  %p612_p3 = scmp.lt.s32.totalorder %s610_s27, %s604_s13 }
  0x46   : > { %p613_p6 = por %p612_p3, %p611_p13 }
  0x48   : > { %p614_p4 = pnand %p613_p6, %p607_p7 }
  0xba   : > { %v276_v6 = vpop.permute.xlu0 %275 }
 0x111   : > { %v355_v7 = vpop.f32.mrb[0].mxu0 }
 0x112   : > { %v356_v9 = vadd.f32 %v355_v7, %v276_v6  ;;  %v357_v10 = vpop.f32.mrb[1].mxu0 }
 0x113   : > { %v358_v12 = vadd.f32 %v357_v10, %v276_v6 }
 0x114   : > { %v362_v13 = vadd.f32 %v360_v8, %v356_v9 }
 0x115   : > { %v363_v14 = vadd.f32 %v361_v11, %v358_v12 }
 0x116   : > { %364 = vst [vmem:[%s257_s9] sm:$0xff] %v362_v13 }
 0x117   : > { %365 = vst [vmem:[%s257_s9 + $0x8] sm:$0xff] %v363_v14 }
 0x118   : > { %617 = shalt.err (!%p614_p4)
}
 0x119   : > { %s618_s11 = scalar_lea.hbm %s852_s10, 256  ;;  %s622_s6 = scalar_lea.hbm %s905_s4, 512 }
 0x11a   : > { %p619_p10 = scmp.ne.s32.totalorder %s852_s10, %s618_s11  ;;  %p623_p2 = scmp.lt.u32.totalorder %s852_s10, %s905_s4 }
 0x11b   : > { %p624_p5 = scmp.lt.u32.totalorder %s622_s6, %s618_s11  ;;  %p626_p9 = scmp.lt.u32.totalorder %s618_s11, %s852_s10 }
 0x11c   : > { %p620_p12 = pnand %p619_p10, %p914_p11 }
 0x11d   : > { %p625_p8 = por %p624_p5, %p623_p2 }
 0x11e   : > { %p621_p1 = pneg %p620_p12 }
 0x11f   : > { %p627_p0 = por %p626_p9, %p625_p8 }
 0x121   : > { %p628_p7 = pnand %p627_p0, %p621_p1 }
 0x123   : > { %631 = shalt.err (!%p628_p7)
}
 0x124   : > { %510 = dma.vmem_to_hbm [thread:$0]  (%p914_p11), %s854_s21, 256, %s852_s10, %s367_s12  }
 0x125 PF: > { %s395_s8 = sand.u32 1, %s666_s15   ;;  %p915_p13 = scmp.ne.s32.totalorder %s910_s30, 0 }
 0x126   : > { %p916_p3 = scmp.ge.s32.totalorder %s686_s20, 2  ;;  %s396_s9 = scalar_lea.sflag [#allocation4], %s395_s8 }
 0x128   : > { %p517_p6 = pnand %p916_p3, %p915_p13 }
 0x12a   : > { %661 = dma.done.wait (!%p517_p6), %s396_s9, 256  }
 0x12b   : > { %663 = vsyncadd (!%p517_p6), %s396_s9, 4294967040  ;;  %s20_s20 = sadd.s32 1, %s686_s20   ;;  %s917_s15 = smov %s670_s16 }
 0x12c   : > { %p17_p4 = scmp.ge.s32.totalorder %s20_s20, 4   ;;  %s918_s16 = smov %s674_s17 }
 0x12d   : > { %s919_s17 = smov %s773_s29  ;;  %s920_s18 = smov %s682_s19 }
 0x12e   : > { %s921_s19 = smov %s923_s23  ;;  %19 = sbr.rel (!%p17_p4) target bundleno = 6 (0x6), region = 84 }
 0x135   :  { %401 = vsyncpa [#allocation3], 1 }
 0x136   :  { %403 = vsyncpa [#allocation3 + $0x1], 1 }
 0x137   :  { %404 = vsyncpa [#allocation4], 1 }
 0x138   :  { %406 = vsyncpa [#allocation4 + $0x1], 1 }

</bundles_post_ra>
